<compile_context>
chip_gen: v5e
topology: v5e:2x2
jax: 0.10.0
libtpu: 0.0.40
codegen_flags: <defaults>
</compile_context>

<pallas_src>
import functools

import jax
import jax.numpy as jnp
from jax.experimental import pallas as pl
from jax.experimental.pallas import tpu as pltpu

STATE_DIM = 4
HIDDEN = 16
ACTION_DIM = 2
OUT_PAD = 128  # lane-dense output slab width (minimum for unmasked stores)


def net_kernel(x_ref, w1_ref, b1_ref, w2p_ref, b2p_ref, o_ref):
    x = x_ref[...]            # (TB, 4)
    w1 = w1_ref[...]          # (4, 16)

    # Layer 1: K=4 contraction unrolled as VPU FMAs (an MXU pass would be pure
    # latency for a 4-wide contraction). Accumulator starts at the bias.
    h = jnp.broadcast_to(b1_ref[...], (x.shape[0], HIDDEN))
    for k in range(STATE_DIM):
        h = h + x[:, k:k + 1] * w1[k:k + 1, :]
    h = jnp.maximum(h, 0.0)   # ReLU

    # Layer 2: (TB,16) @ (16,128) -> lane-dense (TB,128) slab (cols >=2 are 0).
    y = jnp.dot(h, w2p_ref[...], preferred_element_type=jnp.float32) + b2p_ref[...]
    o_ref[...] = y.astype(o_ref.dtype)


@functools.partial(jax.jit, static_argnames=("tb",))
def net_forward(x, w1, b1, w2, b2, *, tb=1024):
    """x: (B, 4) f32; w1: (4,16); b1: (1,16); w2: (16,2); b2: (1,2)."""
    B = x.shape[0]

    # Pad second-layer params to a 128-lane-dense output slab (unmasked stores).
    w2p = jnp.zeros((HIDDEN, OUT_PAD), jnp.float32).at[:, :ACTION_DIM].set(w2)
    b2p = jnp.zeros((1, OUT_PAD), jnp.float32).at[:, :ACTION_DIM].set(b2)

    # Batch tile: multiple of 8 sublanes, capped at `tb` (default 1024 keeps
    # 2 pipeline buffers of x + out far below the scoped-VMEM default, safe on
    # v7x's smaller VMEM as well). Pad B to a multiple of the tile.
    b_round8 = ((B + 7) // 8) * 8
    TB = min(tb, max(8, b_round8))
    B_pad = pl.cdiv(B, TB) * TB
    if B_pad != B:
        x = jnp.pad(x, ((0, B_pad - B), (0, 0)))

    cost = pl.CostEstimate(
        flops=B_pad * (2 * STATE_DIM * HIDDEN + 2 * HIDDEN * OUT_PAD),
        transcendentals=0,
        bytes_accessed=4 * (B_pad * STATE_DIM + B_pad * OUT_PAD
                            + STATE_DIM * HIDDEN + HIDDEN
                            + HIDDEN * OUT_PAD + OUT_PAD),
    )

    out = pl.pallas_call(
        net_kernel,
        out_shape=jax.ShapeDtypeStruct((B_pad, OUT_PAD), jnp.float32),
        grid=(B_pad // TB,),
        in_specs=[
            pl.BlockSpec((TB, STATE_DIM), lambda i: (i, 0)),      # x: streamed
            pl.BlockSpec((STATE_DIM, HIDDEN), lambda i: (0, 0)),  # w1: resident
            pl.BlockSpec((1, HIDDEN), lambda i: (0, 0)),          # b1: resident
            pl.BlockSpec((HIDDEN, OUT_PAD), lambda i: (0, 0)),    # w2 (padded)
            pl.BlockSpec((1, OUT_PAD), lambda i: (0, 0)),         # b2 (padded)
        ],
        out_specs=pl.BlockSpec((TB, OUT_PAD), lambda i: (i, 0)),
        compiler_params=pltpu.CompilerParams(
            dimension_semantics=("parallel",)),  # shards steps across v7x's 2 TCs
        cost_estimate=cost,
    )(x, w1, b1, w2p, b2p)

    # Strip batch padding and lane padding (layout plumbing, fused under jit).
    return out[:B, :ACTION_DIM]


def init_params(key):
    # Matches nn.Linear(4,16) / nn.Linear(16,2): weights ~ N(0, 0.1) as in
    # Net.__init__; biases use PyTorch's default U(-1/sqrt(fan_in), +).
    k1, k2, k3, k4 = jax.random.split(key, 4)
    w1 = 0.1 * jax.random.normal(k1, (STATE_DIM, HIDDEN), dtype=jnp.float32)
    b1 = jax.random.uniform(k2, (1, HIDDEN), dtype=jnp.float32,
                            minval=-1.0 / jnp.sqrt(float(STATE_DIM)),
                            maxval=1.0 / jnp.sqrt(float(STATE_DIM)))
    w2 = 0.1 * jax.random.normal(k3, (HIDDEN, ACTION_DIM), dtype=jnp.float32)
    b2 = jax.random.uniform(k4, (1, ACTION_DIM), dtype=jnp.float32,
                            minval=-1.0 / jnp.sqrt(float(HIDDEN)),
                            maxval=1.0 / jnp.sqrt(float(HIDDEN)))
    return w1, b1, w2, b2


def _ref(x, w1, b1, w2, b2):
    return jnp.maximum(x @ w1 + b1, 0.0) @ w2 + b2


if __name__ == "__main__":
    key = jax.random.PRNGKey(0)
    k_x, k_x2, k_p = jax.random.split(key, 3)
    w1, b1, w2, b2 = init_params(k_p)

    # Small DQN-style batch (dispatch-latency bound; correctness check).
    B = 2
    x = jax.random.normal(k_x, (B, STATE_DIM), dtype=jnp.float32)
    out = jax.block_until_ready(net_forward(x, w1, b1, w2, b2))
    assert out.shape == (B, ACTION_DIM)
    assert jnp.allclose(out, _ref(x, w1, b1, w2, b2), atol=1e-5, rtol=1e-5)

    # Ragged batch with multiple grid steps (exercises tiling + padding paths).
    B2 = 300
    x2 = jax.random.normal(k_x2, (B2, STATE_DIM), dtype=jnp.float32)
    out2 = jax.block_until_ready(net_forward(x2, w1, b1, w2, b2, tb=128))
    assert out2.shape == (B2, ACTION_DIM)
    assert jnp.allclose(out2, _ref(x2, w1, b1, w2, b2), atol=1e-5, rtol=1e-5)

    print("KERNEL_OK")
</pallas_src>

<mosaic_0001>
module attributes {stable_mosaic.version = 11 : i64} {
  func.func @net_kernel(%arg0: i32, %arg1: memref<8x4xf32, #tpu.memory_space<vmem>>, %arg2: memref<4x16xf32, #tpu.memory_space<vmem>>, %arg3: memref<1x16xf32, #tpu.memory_space<vmem>>, %arg4: memref<16x128xf32, #tpu.memory_space<vmem>>, %arg5: memref<1x128xf32, #tpu.memory_space<vmem>>, %arg6: memref<8x128xf32, #tpu.memory_space<vmem>>) attributes {dimension_semantics = [#tpu.dimension_semantics<parallel>], iteration_bounds = array<i64: 1>, scalar_prefetch = 0 : i64, scratch_operands = 0 : i64, tpu.core_type = #tpu.core_type<tc>, window_params = [{transform_indices = @transform_0, window_bounds = array<i64: 8, 4>}, {pipeline_mode = #tpu.pipeline_mode<synchronous>, transform_indices = @transform_1, window_bounds = array<i64: 4, 16>}, {pipeline_mode = #tpu.pipeline_mode<synchronous>, transform_indices = @transform_2, window_bounds = array<i64: 1, 16>}, {pipeline_mode = #tpu.pipeline_mode<synchronous>, transform_indices = @transform_3, window_bounds = array<i64: 16, 128>}, {pipeline_mode = #tpu.pipeline_mode<synchronous>, transform_indices = @transform_4, window_bounds = array<i64: 1, 128>}, {transform_indices = @transform_5, window_bounds = array<i64: 8, 128>}]} {
    %c0 = arith.constant 0 : index
    %c0_0 = arith.constant 0 : index
    %0 = vector.load %arg1[%c0, %c0_0] : memref<8x4xf32, #tpu.memory_space<vmem>>, vector<8x4xf32>
    %c0_1 = arith.constant 0 : index
    %c0_2 = arith.constant 0 : index
    %1 = vector.load %arg2[%c0_1, %c0_2] : memref<4x16xf32, #tpu.memory_space<vmem>>, vector<4x16xf32>
    %c0_3 = arith.constant 0 : index
    %c0_4 = arith.constant 0 : index
    %2 = vector.load %arg3[%c0_3, %c0_4] : memref<1x16xf32, #tpu.memory_space<vmem>>, vector<1x16xf32>
    %3 = vector.shape_cast %2 : vector<1x16xf32> to vector<1x16xf32>
    %4 = vector.broadcast %3 : vector<1x16xf32> to vector<8x16xf32>
    %5 = vector.extract_strided_slice %0 {offsets = [0, 0], sizes = [8, 1], strides = [1, 1]} : vector<8x4xf32> to vector<8x1xf32>
    %6 = vector.extract_strided_slice %1 {offsets = [0, 0], sizes = [1, 16], strides = [1, 1]} : vector<4x16xf32> to vector<1x16xf32>
    %7 = vector.broadcast %5 : vector<8x1xf32> to vector<8x16xf32>
    %8 = vector.broadcast %6 : vector<1x16xf32> to vector<8x16xf32>
    %9 = arith.mulf %7, %8 : vector<8x16xf32>
    %10 = arith.addf %4, %9 : vector<8x16xf32>
    %11 = vector.extract_strided_slice %0 {offsets = [0, 1], sizes = [8, 1], strides = [1, 1]} : vector<8x4xf32> to vector<8x1xf32>
    %12 = vector.extract_strided_slice %1 {offsets = [1, 0], sizes = [1, 16], strides = [1, 1]} : vector<4x16xf32> to vector<1x16xf32>
    %13 = vector.broadcast %11 : vector<8x1xf32> to vector<8x16xf32>
    %14 = vector.broadcast %12 : vector<1x16xf32> to vector<8x16xf32>
    %15 = arith.mulf %13, %14 : vector<8x16xf32>
    %16 = arith.addf %10, %15 : vector<8x16xf32>
    %17 = vector.extract_strided_slice %0 {offsets = [0, 2], sizes = [8, 1], strides = [1, 1]} : vector<8x4xf32> to vector<8x1xf32>
    %18 = vector.extract_strided_slice %1 {offsets = [2, 0], sizes = [1, 16], strides = [1, 1]} : vector<4x16xf32> to vector<1x16xf32>
    %19 = vector.broadcast %17 : vector<8x1xf32> to vector<8x16xf32>
    %20 = vector.broadcast %18 : vector<1x16xf32> to vector<8x16xf32>
    %21 = arith.mulf %19, %20 : vector<8x16xf32>
    %22 = arith.addf %16, %21 : vector<8x16xf32>
    %23 = vector.extract_strided_slice %0 {offsets = [0, 3], sizes = [8, 1], strides = [1, 1]} : vector<8x4xf32> to vector<8x1xf32>
    %24 = vector.extract_strided_slice %1 {offsets = [3, 0], sizes = [1, 16], strides = [1, 1]} : vector<4x16xf32> to vector<1x16xf32>
    %25 = vector.broadcast %23 : vector<8x1xf32> to vector<8x16xf32>
    %26 = vector.broadcast %24 : vector<1x16xf32> to vector<8x16xf32>
    %27 = arith.mulf %25, %26 : vector<8x16xf32>
    %28 = arith.addf %22, %27 : vector<8x16xf32>
    %cst = arith.constant 0.000000e+00 : f32
    %29 = vector.broadcast %cst : f32 to vector<8x16xf32>
    %30 = arith.maximumf %28, %29 : vector<8x16xf32>
    %c0_5 = arith.constant 0 : index
    %c0_6 = arith.constant 0 : index
    %31 = vector.load %arg4[%c0_5, %c0_6] : memref<16x128xf32, #tpu.memory_space<vmem>>, vector<16x128xf32>
    %cst_7 = arith.constant dense<0.000000e+00> : vector<8x128xf32>
    %32 = tpu.matmul %30, %31, %cst_7 {dimension_numbers = #tpu.dot_dimension_numbers<[1], [0], [0], [1], [0, 0, 1, 1], [], []>} : vector<8x16xf32>, vector<16x128xf32>, vector<8x128xf32> -> vector<8x128xf32>
    %c0_8 = arith.constant 0 : index
    %c0_9 = arith.constant 0 : index
    %33 = vector.load %arg5[%c0_8, %c0_9] : memref<1x128xf32, #tpu.memory_space<vmem>>, vector<1x128xf32>
    %34 = vector.broadcast %33 : vector<1x128xf32> to vector<8x128xf32>
    %35 = arith.addf %32, %34 : vector<8x128xf32>
    %c0_10 = arith.constant 0 : index
    %c0_11 = arith.constant 0 : index
    %36 = vector.load %arg6[%c0_10, %c0_11] : memref<8x128xf32, #tpu.memory_space<vmem>>, vector<8x128xf32>
    tpu.vector_store %arg6[%c0_10, %c0_11], %35 {strides = array<i32>} : memref<8x128xf32, #tpu.memory_space<vmem>>, vector<8x128xf32>,
    return
  }
  func.func @transform_0(%arg0: i32) -> (i32, i32) {
    %c0_i32 = arith.constant 0 : i32
    %c0_i32_0 = arith.constant 0 : i32
    return %arg0, %c0_i32 : i32, i32
  }
  func.func @transform_1(%arg0: i32) -> (i32, i32) {
    %c0_i32 = arith.constant 0 : i32
    %c0_i32_0 = arith.constant 0 : i32
    %c0_i32_1 = arith.constant 0 : i32
    return %c0_i32, %c0_i32_0 : i32, i32
  }
  func.func @transform_2(%arg0: i32) -> (i32, i32) {
    %c0_i32 = arith.constant 0 : i32
    %c0_i32_0 = arith.constant 0 : i32
    %c0_i32_1 = arith.constant 0 : i32
    return %c0_i32, %c0_i32_0 : i32, i32
  }
  func.func @transform_3(%arg0: i32) -> (i32, i32) {
    %c0_i32 = arith.constant 0 : i32
    %c0_i32_0 = arith.constant 0 : i32
    %c0_i32_1 = arith.constant 0 : i32
    return %c0_i32, %c0_i32_0 : i32, i32
  }
  func.func @transform_4(%arg0: i32) -> (i32, i32) {
    %c0_i32 = arith.constant 0 : i32
    %c0_i32_0 = arith.constant 0 : i32
    %c0_i32_1 = arith.constant 0 : i32
    return %c0_i32, %c0_i32_0 : i32, i32
  }
  func.func @transform_5(%arg0: i32) -> (i32, i32) {
    %c0_i32 = arith.constant 0 : i32
    %c0_i32_0 = arith.constant 0 : i32
    return %arg0, %c0_i32 : i32, i32
  }
}

</mosaic_0001>

<bundles_post_ra>
// kernel: net_forward.1
= control target key start
LH: loop header
LB: loop body
LE: loop exit
PB: predicated region body
PF: predicated region fallthrough
CT: control target
= control target key end

     0   :  { %v103_v0 = vmov 0   ;;  %v104_v2 = vmov 2   ;;  %v105_v3 = vmov 1   ;;  %v106_v4 = vmov 3   ;;  %s158_s0 = inlined_call_operand.vmem [shape: f32[8,4], index: 0, kind: input, shape index: {}]   ;;  %s159_s2 = inlined_call_operand.vmem [shape: f32[1,16], index: 2, kind: input, shape index: {}]   ;;  %s160_s4 = inlined_call_operand.vmem [shape: f32[1,128], index: 4, kind: input, shape index: {}]   ;;  %s161_s3 = inlined_call_operand.vmem [shape: f32[16,128], index: 3, kind: input, shape index: {}]   ;;  %s162_s1 = inlined_call_operand.vmem [shape: f32[4,16], index: 1, kind: input, shape index: {}]   ;;  %s163_s5 = inlined_call_operand.vmem [shape: f32[8,128], index: 5, kind: output, shape index: {}]  }
   0x1   :  { %96 = vset.pattern.permute.xlu0 %v103_v0  ;;  %v20_v1 = vld [vmem:[%s158_s0] sm:$0xff]  ;;  %98 = vset.pattern.permute.xlu1 %v104_v2  ;;  %v57_v5 = vld [vmem:[%s161_s3 + $0x8] sm:$0xff]  ;;  %vm62_vm0 = vcmask 130048  }
   0x2   :  { %28 = vperm.xlu0 %96, %v20_v1   ;;  %42 = vperm.xlu1 %98, %v20_v1   ;;  %v56_v6 = vld [vmem:[%s161_s3] sm:$0xff] }
   0x3   :  { %80 = vmatpush.msra.mxu0 %v57_v5  ;;  %v21_v7 = vld [vmem:[%s162_s1] sm:$0xf] }
   0x4   :  { %v31_v10 = vperm.slane %v21_v7, 0  ;;  %v101_v11 = vld [vmem:[%s159_s2] ss:$0 sm:$0xff]  ;;  %v38_v13 = vperm.slane %v21_v7, 1  ;;  %v45_v14 = vperm.slane %v21_v7, 2  ;;  %v52_v15 = vperm.slane %v21_v7, 3 }
   0x5   :  { %81 = vmatpush.msra.mxu0 %v56_v6  ;;  %v102_v26 = vld [vmem:[%s160_s4] ss:$0 sm:$0xff] }
   0xa   :  { %97 = vset.pattern.permute.xlu0 %v105_v3  ;;  %99 = vset.pattern.permute.xlu1 %v106_v4 }
   0xb   :  { %35 = vperm.xlu0 %97, %v20_v1   ;;  %49 = vperm.xlu1 %99, %v20_v1  }
  0x13   :  { %100 = vset.pattern.permute.xlu0 %v106_v4 }
  0x74   :  { %v29_v8 = vpop.permute.xlu0 %28  ;;  %v43_v9 = vpop.permute.xlu1 %42 }
  0x75   :  { %v32_v12 = vmul.f32 %v31_v10, %v29_v8  ;;  %v46_v20 = vmul.f32 %v45_v14, %v43_v9 }
  0x77   :  { %v33_v18 = vadd.f32 %v101_v11, %v32_v12 }
  0x7d   :  { %v36_v16 = vpop.permute.xlu0 %35  ;;  %v50_v17 = vpop.permute.xlu1 %49 }
  0x7e   :  { %v39_v19 = vmul.f32 %v38_v13, %v36_v16  ;;  %v53_v22 = vmul.f32 %v52_v15, %v50_v17 }
  0x80   :  { %v40_v21 = vadd.f32 %v39_v19, %v33_v18 }
  0x82   :  { %v47_v23 = vadd.f32 %v46_v20, %v40_v21 }
  0x84   :  { %v54_v24 = vadd.f32 %v53_v22, %v47_v23 }
  0x86   :  { %v55_v25 = vmax.f32 %v54_v24, 0.0 }
  0x88   :  { %91 = vmatmul.msk.f32.vlgmr.msra.gmra.mxu0 %vm62_vm0, %v55_v25 }
 0x105   :  { %v83_v27 = vpop.f32.mrf.mxu0 }
 0x106   :  { %v84_v28 = vadd.f32 %v102_v26, %v83_v27 }
 0x108   :  { %86 = vst [vmem:[%s163_s5] sm:$0xff] %v84_v28 }

</bundles_post_ra>
